<compile_context>
chip_gen: v7x
topology: tpu7x:2x2x1
jax: 0.10.0
libtpu: 0.0.40
codegen_flags: <defaults>
</compile_context>

<pallas_src>
import functools

import jax
import jax.numpy as jnp
from jax.experimental import pallas as pl
from jax.experimental.pallas import tpu as pltpu


def _mlp_kernel(x_ref, w1_ref, b1_ref, wcat_ref, bcat_ref, bh_ref, o_ref, *, bn_pad):
    # Layer 1: Linear + ReLU (bf16 operands, f32 accumulation on the MXU).
    h = jnp.dot(x_ref[...], w1_ref[...], preferred_element_type=jnp.float32)
    h = jnp.maximum(h + b1_ref[...], 0.0)                       # (TB, hidden) f32

    # Fused layer-2 + head: a single (hidden x 2*128) matmul.
    #   cat[:, :bn_pad] = h @ pad(W2)   + pad(b2)   = z  (zero-padded bottleneck)
    #   cat[:, bn_pad:] = h @ (W2 @ Wh) + b2 @ Wh   = z @ Wh
    cat = jnp.dot(h.astype(jnp.bfloat16), wcat_ref[...],
                  preferred_element_type=jnp.float32) + bcat_ref[...]
    z = cat[:, :bn_pad]
    zh = cat[:, bn_pad:]

    # F.normalize(dim=-1, p=2): z / max(||z||, 1e-12) == z * rsqrt(max(sum z^2, 1e-24)).
    # The per-row scale commutes with the (already applied) head matmul; rsqrt
    # issues on the EUP slot.  Zero padding in z contributes nothing to sumsq.
    sumsq = jnp.sum(z * z, axis=-1, keepdims=True)
    inv = jax.lax.rsqrt(jnp.maximum(sumsq, 1e-24))

    o_ref[...] = (inv * zh + bh_ref[...]).astype(o_ref.dtype)


def _round_up(n, m):
    return ((n + m - 1) // m) * m


@functools.partial(jax.jit, static_argnames=("tile_b",))
def mlp_forward(x, params, *, tile_b=2048):
    """x: (B, in_dim).  params: (in,out)-layout f32 weights + (1,out) biases."""
    w1, b1, w2, b2, wh, bh = (params["w1"], params["b1"], params["w2"],
                              params["b2"], params["wh"], params["bh"])
    B, in_dim = x.shape
    hidden = w1.shape[1]
    bneck = w2.shape[1]
    out_dim = wh.shape[1]
    out_dtype = x.dtype

    # --- Fold the head through the normalize; pad bottleneck / head to 128 lanes.
    bn_pad = max(128, _round_up(bneck, 128))
    out_pad = max(128, _round_up(out_dim, 128))
    wh_p = jnp.zeros((bneck, out_pad), jnp.float32).at[:, :out_dim].set(wh)
    bh_p = jnp.zeros((1, out_pad), jnp.float32).at[:, :out_dim].set(bh)
    w2_p = jnp.zeros((hidden, bn_pad), jnp.float32).at[:, :bneck].set(w2)
    b2_p = jnp.zeros((1, bn_pad), jnp.float32).at[:, :bneck].set(b2)
    wcat = jnp.concatenate([w2_p, w2 @ wh_p], axis=1).astype(jnp.bfloat16)
    bcat = jnp.concatenate([b2_p, b2 @ wh_p], axis=1)            # f32, (1, bn+out)
    w1_bf = w1.astype(jnp.bfloat16)

    # --- Batch tiling: multiples of 16 (bf16 sublane pack); keep >= 2 grid tiles
    #     when the batch allows so "parallel" shards across both v7x TensorCores.
    SUB = 16
    b_min = _round_up(B, SUB)
    tb = max(SUB, (min(tile_b, b_min) // SUB) * SUB)
    if b_min >= 2 * SUB:
        tb = min(tb, _round_up(b_min // 2, SUB))
    b_pad = _round_up(B, tb)
    num_tiles = b_pad // tb

    x_bf = x.astype(jnp.bfloat16)
    if b_pad != B:
        x_bf = jnp.zeros((b_pad, in_dim), jnp.bfloat16).at[:B, :].set(x_bf)

    const2d = lambda a: pl.BlockSpec(a.shape, lambda i: (0, 0))  # VMEM-resident

    flops = 2 * b_pad * hidden * (in_dim + bn_pad + out_pad)
    bytes_accessed = (2 * (x_bf.size + w1_bf.size + wcat.size + b_pad * out_pad)
                      + 4 * (b1.size + bcat.size + bh_p.size))

    out_padded = pl.pallas_call(
        functools.partial(_mlp_kernel, bn_pad=bn_pad),
        out_shape=jax.ShapeDtypeStruct((b_pad, out_pad), jnp.bfloat16),
        grid=(num_tiles,),
        in_specs=[
            pl.BlockSpec((tb, in_dim), lambda i: (i, 0)),        # x: batch-tiled
            const2d(w1_bf), const2d(b1),
            const2d(wcat), const2d(bcat), const2d(bh_p),
        ],
        out_specs=pl.BlockSpec((tb, out_pad), lambda i: (i, 0)),
        compiler_params=pltpu.CompilerParams(
            dimension_semantics=("parallel",)),
        # NOTE: at tile_b <= 4096 the double-buffered x/out tiles plus matmul
        # intermediates stay well under the 16 MiB (v5e) / 32 MiB (v6e, v7x)
        # scoped-VMEM defaults; set vmem_limit_bytes here if tile_b is raised.
        cost_estimate=pl.CostEstimate(
            flops=flops, transcendentals=b_pad, bytes_accessed=bytes_accessed),
    )(x_bf, w1_bf, b1, wcat, bcat, bh_p)

    return out_padded[:B, :out_dim].astype(out_dtype)


def init_params(key, in_dim, out_dim, hidden_dim=128, bottleneck_dim=8):
    # Deterministic synthetic init (shapes match the module's nn.Linear layers).
    ks = jax.random.split(key, 6)

    def lin(kw, kb, fan_in, fan_out):
        bound = 1.0 / jnp.sqrt(fan_in)
        w = jax.random.uniform(kw, (fan_in, fan_out), jnp.float32, -bound, bound)
        b = jax.random.uniform(kb, (1, fan_out), jnp.float32, -bound, bound)
        return w, b

    w1, b1 = lin(ks[0], ks[1], in_dim, hidden_dim)
    w2, b2 = lin(ks[2], ks[3], hidden_dim, bottleneck_dim)
    wh, bh = lin(ks[4], ks[5], bottleneck_dim, out_dim)
    return {"w1": w1, "b1": b1, "w2": w2, "b2": b2, "wh": wh, "bh": bh}


def mlp_reference(x, p):
    # f32 reference with the original (unfused) weights.
    h = jnp.maximum(x @ p["w1"] + p["b1"], 0.0)
    z = h @ p["w2"] + p["b2"]
    z = z / jnp.maximum(jnp.sqrt(jnp.sum(z * z, axis=-1, keepdims=True)), 1e-12)
    return z @ p["wh"] + p["bh"]


if __name__ == "__main__":
    key = jax.random.PRNGKey(0)
    kx, kx2, kp = jax.random.split(key, 3)

    in_dim, out_dim = 32, 4
    params = init_params(kp, in_dim, out_dim, hidden_dim=128, bottleneck_dim=8)

    # Small demo batch (single grid tile).
    B = 8
    x = jax.random.normal(kx, (B, in_dim), jnp.float32)
    out = jax.block_until_ready(mlp_forward(x, params))
    ref = mlp_reference(x, params)
    assert out.shape == (B, out_dim)
    # bf16 matmul operands + folded head => looser tolerance than the f32 path.
    assert jnp.allclose(out, ref, atol=3e-2, rtol=3e-2), \
        float(jnp.max(jnp.abs(out - ref)))

    # Non-multiple batch exercising the batch grid + padding path.
    B2 = 37
    x2 = jax.random.normal(kx2, (B2, in_dim), jnp.float32)
    out2 = jax.block_until_ready(mlp_forward(x2, params, tile_b=16))
    ref2 = mlp_reference(x2, params)
    assert out2.shape == (B2, out_dim)
    assert jnp.allclose(out2, ref2, atol=3e-2, rtol=3e-2), \
        float(jnp.max(jnp.abs(out2 - ref2)))

    print("KERNEL_OK")
</pallas_src>

<mosaic_0001>
module attributes {stable_mosaic.version = 11 : i64} {
  func.func @_mlp_kernel(%arg0: i32, %arg1: memref<16x32xbf16, #tpu.memory_space<vmem>>, %arg2: memref<32x128xbf16, #tpu.memory_space<vmem>>, %arg3: memref<1x128xf32, #tpu.memory_space<vmem>>, %arg4: memref<128x256xbf16, #tpu.memory_space<vmem>>, %arg5: memref<1x256xf32, #tpu.memory_space<vmem>>, %arg6: memref<1x128xf32, #tpu.memory_space<vmem>>, %arg7: memref<16x128xbf16, #tpu.memory_space<vmem>>) attributes {dimension_semantics = [#tpu.dimension_semantics<parallel>], iteration_bounds = array<i64: 1>, scalar_prefetch = 0 : i64, scratch_operands = 0 : i64, tpu.core_type = #tpu.core_type<tc>, window_params = [{transform_indices = @transform_0, window_bounds = array<i64: 16, 32>}, {pipeline_mode = #tpu.pipeline_mode<synchronous>, transform_indices = @transform_1, window_bounds = array<i64: 32, 128>}, {pipeline_mode = #tpu.pipeline_mode<synchronous>, transform_indices = @transform_2, window_bounds = array<i64: 1, 128>}, {pipeline_mode = #tpu.pipeline_mode<synchronous>, transform_indices = @transform_3, window_bounds = array<i64: 128, 256>}, {pipeline_mode = #tpu.pipeline_mode<synchronous>, transform_indices = @transform_4, window_bounds = array<i64: 1, 256>}, {pipeline_mode = #tpu.pipeline_mode<synchronous>, transform_indices = @transform_5, window_bounds = array<i64: 1, 128>}, {transform_indices = @transform_6, window_bounds = array<i64: 16, 128>}]} {
    %c0 = arith.constant 0 : index
    %c0_0 = arith.constant 0 : index
    %0 = vector.load %arg1[%c0, %c0_0] : memref<16x32xbf16, #tpu.memory_space<vmem>>, vector<16x32xbf16>
    %c0_1 = arith.constant 0 : index
    %c0_2 = arith.constant 0 : index
    %1 = vector.load %arg2[%c0_1, %c0_2] : memref<32x128xbf16, #tpu.memory_space<vmem>>, vector<32x128xbf16>
    %cst = arith.constant dense<0.000000e+00> : vector<16x128xf32>
    %2 = tpu.matmul %0, %1, %cst {dimension_numbers = #tpu.dot_dimension_numbers<[1], [0], [0], [1], [0, 0, 1, 1], [], []>} : vector<16x32xbf16>, vector<32x128xbf16>, vector<16x128xf32> -> vector<16x128xf32>
    %c0_3 = arith.constant 0 : index
    %c0_4 = arith.constant 0 : index
    %3 = vector.load %arg3[%c0_3, %c0_4] : memref<1x128xf32, #tpu.memory_space<vmem>>, vector<1x128xf32>
    %4 = vector.broadcast %3 : vector<1x128xf32> to vector<16x128xf32>
    %5 = arith.addf %2, %4 : vector<16x128xf32>
    %cst_5 = arith.constant 0.000000e+00 : f32
    %6 = vector.broadcast %cst_5 : f32 to vector<16x128xf32>
    %7 = arith.maximumf %5, %6 : vector<16x128xf32>
    %8 = arith.truncf %7 : vector<16x128xf32> to vector<16x128xbf16>
    %c0_6 = arith.constant 0 : index
    %c0_7 = arith.constant 0 : index
    %9 = vector.load %arg4[%c0_6, %c0_7] : memref<128x256xbf16, #tpu.memory_space<vmem>>, vector<128x256xbf16>
    %cst_8 = arith.constant dense<0.000000e+00> : vector<16x256xf32>
    %10 = tpu.matmul %8, %9, %cst_8 {dimension_numbers = #tpu.dot_dimension_numbers<[1], [0], [0], [1], [0, 0, 1, 1], [], []>} : vector<16x128xbf16>, vector<128x256xbf16>, vector<16x256xf32> -> vector<16x256xf32>
    %c0_9 = arith.constant 0 : index
    %c0_10 = arith.constant 0 : index
    %11 = vector.load %arg5[%c0_9, %c0_10] : memref<1x256xf32, #tpu.memory_space<vmem>>, vector<1x256xf32>
    %12 = vector.broadcast %11 : vector<1x256xf32> to vector<16x256xf32>
    %13 = arith.addf %10, %12 : vector<16x256xf32>
    %14 = vector.extract_strided_slice %13 {offsets = [0, 0], sizes = [16, 128], strides = [1, 1]} : vector<16x256xf32> to vector<16x128xf32>
    %15 = vector.extract_strided_slice %13 {offsets = [0, 128], sizes = [16, 128], strides = [1, 1]} : vector<16x256xf32> to vector<16x128xf32>
    %16 = arith.mulf %14, %14 : vector<16x128xf32>
    %cst_11 = arith.constant dense<0.000000e+00> : vector<16xf32>
    %17 = vector.multi_reduction <add>, %16, %cst_11 [1] : vector<16x128xf32> to vector<16xf32>
    %18 = vector.shape_cast %17 : vector<16xf32> to vector<16x1xf32>
    %cst_12 = arith.constant 1.000000e-24 : f32
    %19 = vector.broadcast %cst_12 : f32 to vector<16x1xf32>
    %20 = arith.maximumf %18, %19 : vector<16x1xf32>
    %21 = math.rsqrt %20 : vector<16x1xf32>
    %22 = vector.broadcast %21 : vector<16x1xf32> to vector<16x128xf32>
    %23 = arith.mulf %22, %15 : vector<16x128xf32>
    %c0_13 = arith.constant 0 : index
    %c0_14 = arith.constant 0 : index
    %24 = vector.load %arg6[%c0_13, %c0_14] : memref<1x128xf32, #tpu.memory_space<vmem>>, vector<1x128xf32>
    %25 = vector.broadcast %24 : vector<1x128xf32> to vector<16x128xf32>
    %26 = arith.addf %23, %25 : vector<16x128xf32>
    %27 = arith.truncf %26 : vector<16x128xf32> to vector<16x128xbf16>
    %c0_15 = arith.constant 0 : index
    %c0_16 = arith.constant 0 : index
    %28 = vector.load %arg7[%c0_15, %c0_16] : memref<16x128xbf16, #tpu.memory_space<vmem>>, vector<16x128xbf16>
    tpu.vector_store %arg7[%c0_15, %c0_16], %27 {strides = array<i32>} : memref<16x128xbf16, #tpu.memory_space<vmem>>, vector<16x128xbf16>,
    return
  }
  func.func @transform_0(%arg0: i32) -> (i32, i32) {
    %c0_i32 = arith.constant 0 : i32
    %c0_i32_0 = arith.constant 0 : i32
    return %arg0, %c0_i32 : i32, i32
  }
  func.func @transform_1(%arg0: i32) -> (i32, i32) {
    %c0_i32 = arith.constant 0 : i32
    %c0_i32_0 = arith.constant 0 : i32
    %c0_i32_1 = arith.constant 0 : i32
    return %c0_i32, %c0_i32_0 : i32, i32
  }
  func.func @transform_2(%arg0: i32) -> (i32, i32) {
    %c0_i32 = arith.constant 0 : i32
    %c0_i32_0 = arith.constant 0 : i32
    %c0_i32_1 = arith.constant 0 : i32
    return %c0_i32, %c0_i32_0 : i32, i32
  }
  func.func @transform_3(%arg0: i32) -> (i32, i32) {
    %c0_i32 = arith.constant 0 : i32
    %c0_i32_0 = arith.constant 0 : i32
    %c0_i32_1 = arith.constant 0 : i32
    return %c0_i32, %c0_i32_0 : i32, i32
  }
  func.func @transform_4(%arg0: i32) -> (i32, i32) {
    %c0_i32 = arith.constant 0 : i32
    %c0_i32_0 = arith.constant 0 : i32
    %c0_i32_1 = arith.constant 0 : i32
    return %c0_i32, %c0_i32_0 : i32, i32
  }
  func.func @transform_5(%arg0: i32) -> (i32, i32) {
    %c0_i32 = arith.constant 0 : i32
    %c0_i32_0 = arith.constant 0 : i32
    %c0_i32_1 = arith.constant 0 : i32
    return %c0_i32, %c0_i32_0 : i32, i32
  }
  func.func @transform_6(%arg0: i32) -> (i32, i32) {
    %c0_i32 = arith.constant 0 : i32
    %c0_i32_0 = arith.constant 0 : i32
    return %arg0, %c0_i32 : i32, i32
  }
}

</mosaic_0001>

<bundles_post_ra>
// kernel: mlp_forward.1
= control target key start
LH: loop header
LB: loop body
LE: loop exit
PB: predicated region body
PF: predicated region fallthrough
CT: control target
= control target key end

     0   :  { %v364_v0 = vmov 0.0   ;;  %vm365_vm0 = vmmov 0   ;;  %vm54_vm1 = vcmask 261120   ;;  %v366_v20 = vmov 0   ;;  %s471_s1 = inlined_call_operand.vmem [shape: bf16[32,128], index: 1, kind: input, shape index: {}]   ;;  %s472_s3 = inlined_call_operand.vmem [shape: bf16[128,256], index: 3, kind: input, shape index: {}]   ;;  %s473_s0 = inlined_call_operand.vmem [shape: bf16[16,32], index: 0, kind: input, shape index: {}]   ;;  %s474_s2 = inlined_call_operand.vmem [shape: f32[1,128], index: 2, kind: input, shape index: {}]   ;;  %s475_s4 = inlined_call_operand.vmem [shape: f32[1,256], index: 4, kind: input, shape index: {}]   ;;  %s476_s5 = inlined_call_operand.vmem [shape: f32[1,128], index: 5, kind: input, shape index: {}]   ;;  %s477_s6 = inlined_call_operand.vmem [shape: bf16[16,128], index: 6, kind: output, shape index: {}]  }
   0x1   :  { %322 = vmatprep.subr.bf16.mxu0 %v364_v0  ;;  %v333_v1 = vld [vmem:[%s471_s1] sm:$0xff]   ;;  %326 = vmatprep.mubr.msk.bf16.mxu0 %vm365_vm0, %v364_v0  ;;  %v334_v2 = vld [vmem:[%s471_s1 + $0x8] sm:$0xff]   ;;  %v339_v6 = vld [vmem:[%s472_s3 + $0x14] ss:$8 sps:$4 sm:$0xff]   ;;  %v120_v31 = vlaneseq }
   0x2   :  { %323 = vmatpush3.bf16.msra.mxu0 %v333_v1  ;;  %v336_v3 = vld [vmem:[%s472_s3 + $0x4] ss:$8 sps:$4 sm:$0xff]   ;;  %v338_v4 = vld [vmem:[%s472_s3] ss:$8 sps:$4 sm:$0xff]   ;;  %v341_v7 = vld [vmem:[%s472_s3 + $0x10] ss:$8 sps:$4 sm:$0xff]   ;;  %242 = vmatprep.mubr.bf16.mxu1 %v366_v20 }
   0x3   :  { %324 = vmatprep.subr.bf16.mxu0 %v364_v0  ;;  %v335_v5 = vld [vmem:[%s473_s0] sm:$0xff]   ;;  %210 = vmatprep.subr.bf16.mxu1 %v336_v3  ;;  %v345_v10 = vld [vmem:[%s472_s3 + $0x34] ss:$8 sps:$4 sm:$0xff]   ;;  %v347_v11 = vld [vmem:[%s472_s3 + $0x30] ss:$8 sps:$4 sm:$0xff]   ;;  %v121_v32 = vshrl.u32 %v120_v31, 7 }
   0x4   :  { %211 = vmatpush1.bf16.msra.mxu1 %v338_v4  ;;  %v342_v8 = vld [vmem:[%s472_s3 + $0x24] ss:$8 sps:$4 sm:$0xff]   ;;  %v344_v9 = vld [vmem:[%s472_s3 + $0x20] ss:$8 sps:$4 sm:$0xff]   ;;  %v351_v14 = vld [vmem:[%s472_s3 + $0x54] ss:$8 sps:$4 sm:$0xff]  }
   0x5   :  { %212 = vmatprep.subr.bf16.mxu1 %v339_v6  ;;  %v348_v12 = vld [vmem:[%s472_s3 + $0x44] ss:$8 sps:$4 sm:$0xff]   ;;  %v350_v13 = vld [vmem:[%s472_s3 + $0x40] ss:$8 sps:$4 sm:$0xff]   ;;  %v353_v15 = vld [vmem:[%s472_s3 + $0x50] ss:$8 sps:$4 sm:$0xff]  }
   0x6   :  { %325 = vmatpush3.bf16.msra.mxu0 %v334_v2  ;;  %v354_v16 = vld [vmem:[%s472_s3 + $0x64] ss:$8 sps:$4 sm:$0xff]   ;;  %v356_v17 = vld [vmem:[%s472_s3 + $0x60] ss:$8 sps:$4 sm:$0xff]   ;;  %v357_v18 = vld [vmem:[%s472_s3 + $0x74] ss:$8 sps:$4 sm:$0xff]  }
   0x7   :  { %v359_v19 = vld [vmem:[%s472_s3 + $0x70] ss:$8 sps:$4 sm:$0xff]   ;;  %v288_v21 = vld [vmem:[%s474_s2] ss:$0 sm:$0xff]  ;;  %v126_v34 = vsub.s32 1, %v121_v32  ;;  %v122_v36 = vsub.s32 0, %v121_v32 }
   0x8   :  { %213 = vmatpush1.bf16.msra.mxu1 %v341_v7  ;;  %v118_v33 = vld [vmem:[%s475_s4] sm:$0x3] }
   0x9   :  { %327 = vmatmul.mubr.msk.bf16.vlgmr.msra.gmra.mrb[0].mxu0 %vm54_vm1, %v335_v5  ;;  %214 = vmatprep.subr.bf16.mxu1 %v342_v8  ;;  %v127_v35 = vrot.slane %v118_v33, %v126_v34  ;;  %v123_v37 = vrot.slane %v118_v33, %v122_v36  ;;  %v309_v55 = vld [vmem:[%s476_s5] ss:$0 sm:$0xff] }
   0xc   :  { %215 = vmatpush1.bf16.msra.mxu1 %v344_v9 }
   0xd   :  { %216 = vmatprep.subr.bf16.mxu1 %v345_v10 }
  0x10   :  { %217 = vmatpush1.bf16.msra.mxu1 %v347_v11 }
  0x11   :  { %218 = vmatprep.subr.bf16.mxu1 %v348_v12 }
  0x14   :  { %219 = vmatpush1.bf16.msra.mxu1 %v350_v13 }
  0x15   :  { %220 = vmatprep.subr.bf16.mxu1 %v351_v14 }
  0x18   :  { %221 = vmatpush1.bf16.msra.mxu1 %v353_v15 }
  0x19   :  { %222 = vmatprep.subr.bf16.mxu1 %v354_v16 }
  0x1c   :  { %223 = vmatpush1.bf16.msra.mxu1 %v356_v17 }
  0x1d   :  { %224 = vmatprep.subr.bf16.mxu1 %v357_v18 }
  0x20   :  { %225 = vmatpush1.bf16.msra.mxu1 %v359_v19 }
  0xdc   :  { %v92_v22 = vpop.f32.mrb[0].mxu0 }
  0xdd   :  { %v93_v23 = vadd.f32 %v288_v21, %v92_v22  ;;  %v328_v24 = vpop.f32.mrb[1].mxu0 }
  0xde   :  { %v95_v25 = vpop.f32.mrb[2].mxu0 }
  0xdf   :  { %v96_v26 = vadd.f32 %v288_v21, %v95_v25  ;;  %v329_v27 = vpop.f32.mrb[3].mxu0  ;;  %v99_v28 = vmax.f32 %v93_v23, 0.0 }
  0xe1   :  { %v100_v29 = vmax.f32 %v96_v26, 0.0 }
  0xe3   :  { %v101_v30 = vpack.c.bf16 %v100_v29, %v99_v28 }
  0xe5   :  { %243 = vmatmul.mubr.bf16.vlgmr.msra.gmra.mrb[0].mxu1 %v101_v30 }
 0x1b8   :  { %v244_v38 = vpop.f32.mrb[0].mxu1 }
 0x1b9   :  { %v246_v39 = vpop.f32.mrb[1].mxu1  ;;  %v245_v40 = vadd.f32 %v244_v38, %v123_v37 }
 0x1ba   :  { %v247_v41 = vadd.f32 %v246_v39, %v127_v35  ;;  %v248_v42 = vpop.f32.mrb[2].mxu1 }
 0x1bb   :  { %v249_v43 = vadd.f32 %v248_v42, %v123_v37  ;;  %v250_v44 = vpop.f32.mrb[3].mxu1  ;;  %v253_v45 = vmul.f32 %v245_v40, %v245_v40 }
 0x1bc   :  { %v251_v46 = vadd.f32 %v250_v44, %v127_v35 }
 0x1bd   :  { %255 = vadd.xlane.f32.xlu0 %v253_v45  ;;  %v254_v47 = vmul.f32 %v249_v43, %v249_v43 }
 0x1c1   :  { %257 = vadd.xlane.f32.xlu0 %v254_v47 }
 0x24a   :  { %v256_v48 = vpop.xlane.xlu0 %255 }
 0x24b   :  { %v259_v49 = vmax.f32 %v256_v48, 1e-24 }
 0x24d   :  { %360 = vrsqrt.f32 %v259_v49 }
 0x24e   :  { %v258_v50 = vpop.xlane.xlu0 %257 }
 0x24f   :  { %v260_v51 = vmax.f32 %v258_v50, 1e-24 }
 0x251   :  { %362 = vrsqrt.f32 %v260_v51 }
 0x257   :  { %v361_v52 = vpop.eup %360 }
 0x258   :  { %v263_v53 = vmul.f32 %v361_v52, %v247_v41 }
 0x25a   :  { %v272_v57 = vadd.f32 %v309_v55, %v263_v53 }
 0x25b   :  { %v363_v54 = vpop.eup %362 }
 0x25c   :  { %v264_v56 = vmul.f32 %v363_v54, %v251_v46 }
 0x25e   :  { %v273_v58 = vadd.f32 %v309_v55, %v264_v56 }
 0x260   :  { %v317_v59 = vpack.c.bf16 %v273_v58, %v272_v57 }
 0x262   :  { %318 = vst [vmem:[%s477_s6] sm:$0xff] %v317_v59  }

</bundles_post_ra>
